<compile_context>
chip_gen: v7x
topology: tpu7x:2x2x1
jax: 0.10.0
libtpu: 0.0.40
codegen_flags: <defaults>
</compile_context>

<pallas_src>
import jax
import jax.numpy as jnp
from jax.experimental import pallas as pl
from jax.experimental.pallas import tpu as pltpu


def mlp_kernel(x_ref, w1_ref, b1_ref, w2_ref, b2_ref, w3_ref, b3_ref, o_ref):
    # Layer 1: [tb, 384](bf16) @ [384, 128](bf16) -> f32 acc, + b1, ReLU
    h1 = jnp.dot(x_ref[...], w1_ref[...], preferred_element_type=jnp.float32)
    h1 = jnp.maximum(h1 + b1_ref[...], 0.0)
    # Layer 2: [tb, 128] @ [128, 64] -> f32, + b2, ReLU
    h2 = jnp.dot(h1, w2_ref[...], preferred_element_type=jnp.float32)
    h2 = jnp.maximum(h2 + b2_ref[...], 0.0)
    # Layer 3 (64 -> 1): VPU mul + lane reduction (w3 is the PyTorch [1, 64]
    # weight row).  Result is a [1, tb] lane-dense slab.
    y = jnp.sum(h2 * w3_ref[...], axis=-1)[None, :] + b3_ref[...]
    o_ref[...] = y.astype(o_ref.dtype)


def nn_reg_bert_forward(x, params, *, tb=512):
    """x: [B, input_size] float32.  params: w1[F,128], b1[1,128], w2[128,64],
    b2[1,64], w3[1,64] (PyTorch layer3 weight), b3[1,1]."""
    B, F = x.shape

    # Pick a lane-aligned tile (multiple of 128) and pad the batch to it.
    B_pad = pl.cdiv(B, 128) * 128
    tb = max(128, (min(tb, B_pad) // 128) * 128)
    B_pad = pl.cdiv(B_pad, tb) * tb
    if B_pad != B:
        x = jnp.pad(x, ((0, B_pad - B), (0, 0)))

    # bf16 on the dominant HBM stream (x, w1); accumulation stays f32.
    x_bf = x.astype(jnp.bfloat16)
    w1 = params["w1"].astype(jnp.bfloat16)
    b1 = params["b1"]
    w2 = params["w2"]
    b2 = params["b2"]
    w3 = params["w3"]      # [1, 64]
    b3 = params["b3"]      # [1, 1]

    num_blocks = B_pad // tb
    flops = 2 * B_pad * (F * 128 + 128 * 64 + 64)
    bytes_accessed = (
        x_bf.size * 2 + w1.size * 2
        + (b1.size + w2.size + b2.size + w3.size + b3.size) * 4
        + B_pad * 4
    )

    out_row = pl.pallas_call(
        mlp_kernel,
        out_shape=jax.ShapeDtypeStruct((1, B_pad), jnp.float32),
        grid_spec=pltpu.PrefetchScalarGridSpec(
            num_scalar_prefetch=0,
            grid=(num_blocks,),
            in_specs=[
                pl.BlockSpec((tb, F), lambda i: (i, 0)),       # x tile
                pl.BlockSpec(w1.shape, lambda i: (0, 0)),      # w1 (resident)
                pl.BlockSpec(b1.shape, lambda i: (0, 0)),      # b1
                pl.BlockSpec(w2.shape, lambda i: (0, 0)),      # w2
                pl.BlockSpec(b2.shape, lambda i: (0, 0)),      # b2
                pl.BlockSpec(w3.shape, lambda i: (0, 0)),      # w3 row
                pl.BlockSpec(b3.shape, lambda i: (0, 0)),      # b3
            ],
            out_specs=pl.BlockSpec((1, tb), lambda i: (0, i)),  # lane-dense
        ),
        compiler_params=pltpu.CompilerParams(
            dimension_semantics=("parallel",),
            vmem_limit_bytes=32 * 1024 * 1024,
        ),
        cost_estimate=pl.CostEstimate(
            flops=flops, transcendentals=0, bytes_accessed=bytes_accessed
        ),
    )(x_bf, w1, b1, w2, b2, w3, b3)

    # Slice off batch padding and restore the PyTorch [B, 1] output shape.
    return out_row[0, :B].reshape(B, 1)


def init_params(key, input_size=384):
    """nn.Linear-style uniform(-1/sqrt(fan_in), +1/sqrt(fan_in)) init.
    Weights stored as [in, out]; layer3 stored as its PyTorch [1, 64] row."""
    ks = jax.random.split(key, 6)

    def linear(kw, kb, fan_in, fan_out):
        bound = 1.0 / jnp.sqrt(jnp.float32(fan_in))
        w = jax.random.uniform(kw, (fan_in, fan_out), jnp.float32, -bound, bound)
        b = jax.random.uniform(kb, (1, fan_out), jnp.float32, -bound, bound)
        return w, b

    w1, b1 = linear(ks[0], ks[1], input_size, 128)
    w2, b2 = linear(ks[2], ks[3], 128, 64)
    w3, b3 = linear(ks[4], ks[5], 64, 1)
    return {"w1": w1, "b1": b1, "w2": w2, "b2": b2,
            "w3": w3.T, "b3": b3}          # w3 as [1, 64] row


def reference_forward(x, p):
    """Matches the kernel's precision choices (bf16 x/w1, f32 accumulation)."""
    h = jnp.dot(x.astype(jnp.bfloat16), p["w1"].astype(jnp.bfloat16),
                preferred_element_type=jnp.float32)
    h = jnp.maximum(h + p["b1"], 0.0)
    h = jnp.maximum(jnp.dot(h, p["w2"], preferred_element_type=jnp.float32)
                    + p["b2"], 0.0)
    return jnp.sum(h * p["w3"], axis=-1, keepdims=True) + p["b3"]


if __name__ == "__main__":
    key = jax.random.PRNGKey(0)
    k_params, k_x = jax.random.split(key)

    input_size = 384
    batch = 8

    params = init_params(k_params, input_size=input_size)
    x = jax.random.normal(k_x, (batch, input_size), dtype=jnp.float32)

    out = nn_reg_bert_forward(x, params)
    out = jax.block_until_ready(out)

    ref = reference_forward(x, params)
    assert out.shape == (batch, 1), out.shape
    assert jnp.allclose(out, ref, atol=5e-3, rtol=5e-3), "mismatch vs JAX reference"

    print("KERNEL_OK")
</pallas_src>

<mosaic_0001>
module attributes {stable_mosaic.version = 11 : i64} {
  func.func @mlp_kernel(%arg0: i32, %arg1: memref<128x384xbf16, #tpu.memory_space<vmem>>, %arg2: memref<384x128xbf16, #tpu.memory_space<vmem>>, %arg3: memref<1x128xf32, #tpu.memory_space<vmem>>, %arg4: memref<128x64xf32, #tpu.memory_space<vmem>>, %arg5: memref<1x64xf32, #tpu.memory_space<vmem>>, %arg6: memref<1x64xf32, #tpu.memory_space<vmem>>, %arg7: memref<1x1xf32, #tpu.memory_space<vmem>>, %arg8: memref<1x128xf32, #tpu.memory_space<vmem>>) attributes {dimension_semantics = [#tpu.dimension_semantics<parallel>], iteration_bounds = array<i64: 1>, scalar_prefetch = 0 : i64, scratch_operands = 0 : i64, tpu.core_type = #tpu.core_type<tc>, window_params = [{transform_indices = @transform_0, window_bounds = array<i64: 128, 384>}, {pipeline_mode = #tpu.pipeline_mode<synchronous>, transform_indices = @transform_1, window_bounds = array<i64: 384, 128>}, {pipeline_mode = #tpu.pipeline_mode<synchronous>, transform_indices = @transform_2, window_bounds = array<i64: 1, 128>}, {pipeline_mode = #tpu.pipeline_mode<synchronous>, transform_indices = @transform_3, window_bounds = array<i64: 128, 64>}, {pipeline_mode = #tpu.pipeline_mode<synchronous>, transform_indices = @transform_4, window_bounds = array<i64: 1, 64>}, {pipeline_mode = #tpu.pipeline_mode<synchronous>, transform_indices = @transform_5, window_bounds = array<i64: 1, 64>}, {pipeline_mode = #tpu.pipeline_mode<synchronous>, transform_indices = @transform_6, window_bounds = array<i64: 1, 1>}, {transform_indices = @transform_7, window_bounds = array<i64: 1, 128>}]} {
    %c0 = arith.constant 0 : index
    %c0_0 = arith.constant 0 : index
    %0 = vector.load %arg1[%c0, %c0_0] : memref<128x384xbf16, #tpu.memory_space<vmem>>, vector<128x384xbf16>
    %c0_1 = arith.constant 0 : index
    %c0_2 = arith.constant 0 : index
    %1 = vector.load %arg2[%c0_1, %c0_2] : memref<384x128xbf16, #tpu.memory_space<vmem>>, vector<384x128xbf16>
    %cst = arith.constant dense<0.000000e+00> : vector<128x128xf32>
    %2 = tpu.matmul %0, %1, %cst {dimension_numbers = #tpu.dot_dimension_numbers<[1], [0], [0], [1], [0, 0, 1, 1], [], []>} : vector<128x384xbf16>, vector<384x128xbf16>, vector<128x128xf32> -> vector<128x128xf32>
    %c0_3 = arith.constant 0 : index
    %c0_4 = arith.constant 0 : index
    %3 = vector.load %arg3[%c0_3, %c0_4] : memref<1x128xf32, #tpu.memory_space<vmem>>, vector<1x128xf32>
    %4 = vector.broadcast %3 : vector<1x128xf32> to vector<128x128xf32>
    %5 = arith.addf %2, %4 : vector<128x128xf32>
    %cst_5 = arith.constant 0.000000e+00 : f32
    %6 = vector.broadcast %cst_5 : f32 to vector<128x128xf32>
    %7 = arith.maximumf %5, %6 : vector<128x128xf32>
    %c0_6 = arith.constant 0 : index
    %c0_7 = arith.constant 0 : index
    %8 = vector.load %arg4[%c0_6, %c0_7] : memref<128x64xf32, #tpu.memory_space<vmem>>, vector<128x64xf32>
    %cst_8 = arith.constant dense<0.000000e+00> : vector<128x64xf32>
    %9 = tpu.matmul %7, %8, %cst_8 {dimension_numbers = #tpu.dot_dimension_numbers<[1], [0], [0], [1], [0, 0, 1, 1], [], []>} : vector<128x128xf32>, vector<128x64xf32>, vector<128x64xf32> -> vector<128x64xf32>
    %c0_9 = arith.constant 0 : index
    %c0_10 = arith.constant 0 : index
    %10 = vector.load %arg5[%c0_9, %c0_10] : memref<1x64xf32, #tpu.memory_space<vmem>>, vector<1x64xf32>
    %11 = vector.broadcast %10 : vector<1x64xf32> to vector<128x64xf32>
    %12 = arith.addf %9, %11 : vector<128x64xf32>
    %cst_11 = arith.constant 0.000000e+00 : f32
    %13 = vector.broadcast %cst_11 : f32 to vector<128x64xf32>
    %14 = arith.maximumf %12, %13 : vector<128x64xf32>
    %c0_12 = arith.constant 0 : index
    %c0_13 = arith.constant 0 : index
    %15 = vector.load %arg6[%c0_12, %c0_13] : memref<1x64xf32, #tpu.memory_space<vmem>>, vector<1x64xf32>
    %16 = vector.broadcast %15 : vector<1x64xf32> to vector<128x64xf32>
    %17 = arith.mulf %14, %16 : vector<128x64xf32>
    %cst_14 = arith.constant dense<0.000000e+00> : vector<128xf32>
    %18 = vector.multi_reduction <add>, %17, %cst_14 [1] : vector<128x64xf32> to vector<128xf32>
    %19 = vector.shape_cast %18 : vector<128xf32> to vector<1x128xf32>
    %c0_15 = arith.constant 0 : index
    %c0_16 = arith.constant 0 : index
    %20 = vector.load %arg7[%c0_15, %c0_16] : memref<1x1xf32, #tpu.memory_space<vmem>>, vector<1x1xf32>
    %21 = vector.broadcast %20 : vector<1x1xf32> to vector<1x128xf32>
    %22 = arith.addf %19, %21 : vector<1x128xf32>
    %c0_17 = arith.constant 0 : index
    %c0_18 = arith.constant 0 : index
    %23 = vector.load %arg8[%c0_17, %c0_18] : memref<1x128xf32, #tpu.memory_space<vmem>>, vector<1x128xf32>
    tpu.vector_store %arg8[%c0_17, %c0_18], %22 {strides = array<i32>} : memref<1x128xf32, #tpu.memory_space<vmem>>, vector<1x128xf32>,
    return
  }
  func.func @transform_0(%arg0: i32) -> (i32, i32) {
    %c0_i32 = arith.constant 0 : i32
    %c0_i32_0 = arith.constant 0 : i32
    return %arg0, %c0_i32 : i32, i32
  }
  func.func @transform_1(%arg0: i32) -> (i32, i32) {
    %c0_i32 = arith.constant 0 : i32
    %c0_i32_0 = arith.constant 0 : i32
    %c0_i32_1 = arith.constant 0 : i32
    return %c0_i32, %c0_i32_0 : i32, i32
  }
  func.func @transform_2(%arg0: i32) -> (i32, i32) {
    %c0_i32 = arith.constant 0 : i32
    %c0_i32_0 = arith.constant 0 : i32
    %c0_i32_1 = arith.constant 0 : i32
    return %c0_i32, %c0_i32_0 : i32, i32
  }
  func.func @transform_3(%arg0: i32) -> (i32, i32) {
    %c0_i32 = arith.constant 0 : i32
    %c0_i32_0 = arith.constant 0 : i32
    %c0_i32_1 = arith.constant 0 : i32
    return %c0_i32, %c0_i32_0 : i32, i32
  }
  func.func @transform_4(%arg0: i32) -> (i32, i32) {
    %c0_i32 = arith.constant 0 : i32
    %c0_i32_0 = arith.constant 0 : i32
    %c0_i32_1 = arith.constant 0 : i32
    return %c0_i32, %c0_i32_0 : i32, i32
  }
  func.func @transform_5(%arg0: i32) -> (i32, i32) {
    %c0_i32 = arith.constant 0 : i32
    %c0_i32_0 = arith.constant 0 : i32
    %c0_i32_1 = arith.constant 0 : i32
    return %c0_i32, %c0_i32_0 : i32, i32
  }
  func.func @transform_6(%arg0: i32) -> (i32, i32) {
    %c0_i32 = arith.constant 0 : i32
    %c0_i32_0 = arith.constant 0 : i32
    %c0_i32_1 = arith.constant 0 : i32
    return %c0_i32, %c0_i32_0 : i32, i32
  }
  func.func @transform_7(%arg0: i32) -> (i32, i32) {
    %c0_i32 = arith.constant 0 : i32
    %c0_i32_0 = arith.constant 0 : i32
    return %c0_i32, %arg0 : i32, i32
  }
}

</mosaic_0001>

<bundles_post_ra>
// kernel: tpu_custom_call.1
= control target key start
LH: loop header
LB: loop body
LE: loop exit
PB: predicated region body
PF: predicated region fallthrough
CT: control target
= control target key end

     0   :  { %s1764_s0 = inlined_call_operand.vmem [shape: bf16[128,384], index: 0, kind: input, shape index: {}]   ;;  %s1765_s1 = inlined_call_operand.hbm [shape: bf16[384,128], index: 1, kind: input, shape index: {}]   ;;  %s1766_s2 = inlined_call_operand.vmem [shape: f32[1,128], index: 2, kind: input, shape index: {}]   ;;  %s1767_s3 = inlined_call_operand.vmem [shape: f32[128,64], index: 3, kind: input, shape index: {}]   ;;  %s1768_s4 = inlined_call_operand.vmem [shape: f32[1,64], index: 4, kind: input, shape index: {}]   ;;  %s1769_s5 = inlined_call_operand.vmem [shape: f32[1,64], index: 5, kind: input, shape index: {}]   ;;  %s1770_s6 = inlined_call_operand.<no memory space> [shape: f32[1,1], index: 6, kind: input, shape index: {}]   ;;  %s1771_s7 = inlined_call_operand.hbm [shape: f32[1,128], index: 7, kind: output, shape index: {}]  }
   0x1   :  { %v12_v0 = vstv %s1770_s6 }
   0x2   :  { %13 = vst [vmem:[#allocation2] sm:$0x1] %v12_v0 }
   0x3   :  { %14 = vsyncpa [#allocation4], 0 }
   0x4   :  { %15 = vsyncpa [#allocation5], 0  ;;  %s1433_s26 = smov [#allocation3]   ;;  %s1385_s30 = scalar_lea.hbm %s1765_s1, 3072 }
   0x5   :  { %s23_s27 = sshll.u32 %s1433_s26, 4  ;;  %p1386_p0 = scmp.ne.s32.totalorder %s1765_s1, %s1385_s30  ;;  %s24_s27 = int_to_ptr.vmem [resolvable:$true] %s23_s27 }
   0x6   :  { %p1389_p1 = scmp.lt.u32.totalorder %s1385_s30, %s1765_s1 }
   0x8   :  { %p1391_p2 = pnand %p1389_p1, %p1386_p0 }
   0xa   :  { %1394 = shalt.err (!%p1391_p2)
}
   0xb   :  { %s1395_s6 = scalar_lea.vmem %s24_s27, 3072  ;;  %p1400_p4 = scmp.lt.s32.totalorder %s24_s27, %s24_s27 }
   0xc   :  { %p1396_p3 = scmp.ne.s32.totalorder %s24_s27, %s1395_s6  ;;  %p1401_p5 = scmp.lt.s32.totalorder %s1395_s6, %s1395_s6 }
   0xe   :  { %p1402_p6 = por %p1401_p5, %p1400_p4 }
  0x10   :  { %p1403_p7 = pnand %p1402_p6, %p1396_p3 }
  0x12   :  { %1406 = shalt.err (!%p1403_p7)
}
  0x13   :  { %s1434_s12 = smov 64   ;;  %s1435_s13 = smov 4  }
  0x14   :  { %29 = dma.hbm_to_vmem [thread:$0]  %s1765_s1, 3072, %s24_s27, [#allocation4], %s1434_s12, %s1434_s12, %s1435_s13  }
  0x15   :  { %1429 = dma.done.wait [#allocation4], 3072  }
  0x16   :  { %1430 = vsyncadd [#allocation4], 4294964224  ;;  %v1329_v1 = vld [vmem:[#allocation3 + $0x40] sm:$0xff]   ;;  %v1331_v3 = vld [vmem:[#allocation3 + $0x48] sm:$0xff]   ;;  %vm820_vm0 = vcmask 523264   ;;  %vm922_vm1 = vcmask 130112  }
  0x17   :  { %v1330_v2 = vld [vmem:[#allocation3] sm:$0xff]   ;;  %1090 = vmatprep.subr.bf16.mxu0 %v1329_v1  ;;  %v1333_v5 = vld [vmem:[#allocation3 + $0x8] sm:$0xff]   ;;  %v1334_v6 = vld [vmem:[#allocation3 + $0x50] sm:$0xff]   ;;  %vm929_vm2 = vcmask 195712   ;;  %vm936_vm3 = vcmask 261312   ;;  %vm943_vm4 = vcmask 326912  }
  0x18   :  { %1091 = vmatpush3.bf16.msra.mxu0 %v1330_v2  ;;  %v1332_v4 = vld [vmem:[#allocation3 + $0x80] sm:$0xff]   ;;  %v1335_v7 = vld [vmem:[#allocation3 + $0x88] sm:$0xff]   ;;  %v1336_v8 = vld [vmem:[#allocation3 + $0x10] sm:$0xff]   ;;  %vm950_vm5 = vcmask 392512   ;;  %vm957_vm6 = vcmask 458112   ;;  %vm964_vm7 = vcmask 523712  }
  0x19   :  { %1092 = vmatprep.subr.bf16.mxu0 %v1331_v3  ;;  %1202 = vmatprep.subr.bf16.mxu1 %v1332_v4  ;;  %v1337_v9 = vld [vmem:[#allocation3 + $0x58] sm:$0xff]   ;;  %v1338_v10 = vld [vmem:[#allocation3 + $0x90] sm:$0xff]   ;;  %v1340_v12 = vld [vmem:[#allocation3 + $0x60] sm:$0xff]   ;;  %vm971_vm8 = vcmask 589312   ;;  %vm978_vm9 = vcmask 654912   ;;  %vm985_vm10 = vcmask 720512  }
  0x1a   :  { %1203 = vmatpush3.bf16.msra.mxu1 %v1332_v4  ;;  %v1339_v11 = vld [vmem:[#allocation3 + $0x18] sm:$0xff]   ;;  %v1342_v14 = vld [vmem:[#allocation3 + $0x20] sm:$0xff]   ;;  %v1343_v16 = vld [vmem:[#allocation3 + $0x68] sm:$0xff]   ;;  %vm992_vm11 = vcmask 786112   ;;  %vm999_vm12 = vcmask 851712   ;;  %vm1006_vm13 = vcmask 917312  }
  0x1b   :  { %1204 = vmatprep.subr.bf16.mxu1 %v1335_v7  ;;  %v1341_v13 = vld [vmem:[#allocation3 + $0x98] sm:$0xff]   ;;  %v1344_v15 = vld [vmem:[#allocation3 + $0xa0] sm:$0xff]   ;;  %v1345_v17 = vld [vmem:[#allocation3 + $0x28] sm:$0xff]   ;;  %vm1013_vm14 = vcmask 982912   ;;  %vm1020_vm15 = vcmask 1048512  }
  0x1c   :  { %1093 = vmatpush3.bf16.msra.mxu0 %v1333_v5  ;;  %v1347_v18 = vld [vmem:[#allocation3 + $0xa8] sm:$0xff]   ;;  %v1346_v19 = vld [vmem:[#allocation3 + $0x70] sm:$0xff]   ;;  %v1349_v21 = vld [vmem:[#allocation3 + $0x78] sm:$0xff]  }
  0x1d   :  { %1094 = vmatprep.subr.bf16.mxu0 %v1334_v6  ;;  %v1348_v20 = vld [vmem:[#allocation3 + $0x30] sm:$0xff]   ;;  %v1351_v24 = vld [vmem:[#allocation3 + $0x38] sm:$0xff]   ;;  %v614_v36 = vld [vmem:[%s1767_s3 + $0x8] sm:$0xff] }
  0x1e   :  { %1205 = vmatpush3.bf16.msra.mxu1 %v1335_v7  ;;  %v1350_v22 = vld [vmem:[#allocation3 + $0xb0] sm:$0xff]   ;;  %v1355_v26 = vld [vmem:[#allocation3 + $0xb8] sm:$0xff]   ;;  %v618_v42 = vld [vmem:[%s1767_s3 + $0x28] sm:$0xff] }
  0x1f   :  { %1206 = vmatprep.subr.bf16.mxu1 %v1338_v10  ;;  %v1354_v23 = vld [vmem:[%s1764_s0 + $0x4] ss:$12 sps:$4 sm:$0xff]   ;;  %v1356_v25 = vld [vmem:[%s1764_s0 + $0x8] ss:$12 sps:$4 sm:$0xff]   ;;  %v1352_v27 = vld [vmem:[%s1764_s0] ss:$12 sps:$4 sm:$0xff]  }
  0x20   :  { %1095 = vmatpush3.bf16.msra.mxu0 %v1336_v8  ;;  %435 = vmatprep.mubr.bf16.mxu0 %v1354_v23  ;;  %v1358_v28 = vld [vmem:[%s1764_s0 + $0x1c] ss:$12 sps:$4 sm:$0xff]   ;;  %v1357_v29 = vld [vmem:[%s1764_s0 + $0x20] ss:$12 sps:$4 sm:$0xff]   ;;  %v1364_v30 = vld [vmem:[%s1764_s0 + $0x38] ss:$12 sps:$4 sm:$0xff]  }
  0x21   :  { %1096 = vmatprep.subr.bf16.mxu0 %v1337_v9  ;;  %1218 = vmatprep.mubr.bf16.mxu1 %v1356_v25  ;;  %v1360_v31 = vld [vmem:[%s1764_s0 + $0x18] ss:$12 sps:$4 sm:$0xff]   ;;  %v1361_v32 = vld [vmem:[%s1764_s0 + $0x34] ss:$12 sps:$4 sm:$0xff]   ;;  %v1365_v33 = vld [vmem:[%s1764_s0 + $0x50] ss:$12 sps:$4 sm:$0xff]  }
  0x22   :  { %1207 = vmatpush3.bf16.msra.mxu1 %v1338_v10  ;;  %v1372_v34 = vld [vmem:[%s1764_s0 + $0x68] ss:$12 sps:$4 sm:$0xff]   ;;  %v613_v35 = vld [vmem:[%s1767_s3] sm:$0xff]  ;;  %v616_v38 = vld [vmem:[%s1767_s3 + $0x18] sm:$0xff] }
  0x23   :  { %1208 = vmatprep.subr.bf16.mxu1 %v1341_v13  ;;  %v615_v37 = vld [vmem:[%s1767_s3 + $0x10] sm:$0xff]  ;;  %v1290_v39 = vpack.c.bf16 %v614_v36, %v613_v35  ;;  %v617_v41 = vld [vmem:[%s1767_s3 + $0x20] sm:$0xff]  ;;  %v1366_v44 = vld [vmem:[%s1764_s0 + $0x4c] ss:$12 sps:$4 sm:$0xff]  }
  0x24   :  { %1097 = vmatpush3.bf16.msra.mxu0 %v1339_v11  ;;  %v1294_v40 = vpack.c.bf16 %v616_v38, %v615_v37  ;;  %v1363_v43 = vld [vmem:[%s1764_s0 + $0x30] ss:$12 sps:$4 sm:$0xff]   ;;  %v1298_v45 = vpack.c.bf16 %v618_v42, %v617_v41  ;;  %v1373_v46 = vld [vmem:[%s1764_s0 + $0x80] ss:$12 sps:$4 sm:$0xff]   ;;  %v1380_v49 = vld [vmem:[%s1764_s0 + $0x98] ss:$12 sps:$4 sm:$0xff]  }
  0x25   :  { %1098 = vmatprep.subr.bf16.mxu0 %v1340_v12  ;;  %v619_v47 = vld [vmem:[%s1767_s3 + $0x30] sm:$0xff]  ;;  %v620_v48 = vld [vmem:[%s1767_s3 + $0x38] sm:$0xff]  ;;  %v621_v51 = vld [vmem:[%s1767_s3 + $0x40] sm:$0xff] }
  0x26   :  { %1209 = vmatpush3.bf16.msra.mxu1 %v1341_v13  ;;  %v1302_v50 = vpack.c.bf16 %v620_v48, %v619_v47  ;;  %v622_v52 = vld [vmem:[%s1767_s3 + $0x48] sm:$0xff]  ;;  %v1369_v54 = vld [vmem:[%s1764_s0 + $0x64] ss:$12 sps:$4 sm:$0xff]   ;;  %v1377_v60 = vld [vmem:[%s1764_s0 + $0x94] ss:$12 sps:$4 sm:$0xff]  }
  0x27   :  { %1210 = vmatprep.subr.bf16.mxu1 %v1344_v15  ;;  %v1368_v53 = vld [vmem:[%s1764_s0 + $0x48] ss:$12 sps:$4 sm:$0xff]   ;;  %v1306_v55 = vpack.c.bf16 %v622_v52, %v621_v51  ;;  %v1381_v56 = vld [vmem:[%s1764_s0 + $0xb0] ss:$12 sps:$4 sm:$0xff]   ;;  %v1371_v57 = vld [vmem:[%s1764_s0 + $0x60] ss:$12 sps:$4 sm:$0xff]  }
  0x28   :  { %1099 = vmatpush3.bf16.msra.mxu0 %v1342_v14  ;;  %v1374_v58 = vld [vmem:[%s1764_s0 + $0x7c] ss:$12 sps:$4 sm:$0xff]   ;;  %v1376_v59 = vld [vmem:[%s1764_s0 + $0x78] ss:$12 sps:$4 sm:$0xff]   ;;  %v623_v0 = vld [vmem:[%s1767_s3 + $0x50] sm:$0xff] }
  0x29   :  { %1100 = vmatprep.subr.bf16.mxu0 %v1343_v16  ;;  %v1379_v61 = vld [vmem:[%s1764_s0 + $0x90] ss:$12 sps:$4 sm:$0xff]   ;;  %v1382_v62 = vld [vmem:[%s1764_s0 + $0xac] ss:$12 sps:$4 sm:$0xff]   ;;  %v1384_v63 = vld [vmem:[%s1764_s0 + $0xa8] ss:$12 sps:$4 sm:$0xff]  }
  0x2a   :  { %1211 = vmatpush3.bf16.msra.mxu1 %v1344_v15  ;;  %v624_v1 = vld [vmem:[%s1767_s3 + $0x58] sm:$0xff]  ;;  %v625_v3 = vld [vmem:[%s1767_s3 + $0x60] sm:$0xff]  ;;  %v626_v4 = vld [vmem:[%s1767_s3 + $0x68] sm:$0xff] }
  0x2b   :  { %1212 = vmatprep.subr.bf16.mxu1 %v1347_v18  ;;  %v1310_v2 = vpack.c.bf16 %v624_v1, %v623_v0  ;;  %v1314_v5 = vpack.c.bf16 %v626_v4, %v625_v3  ;;  %v627_v6 = vld [vmem:[%s1767_s3 + $0x70] sm:$0xff]  ;;  %v628_v7 = vld [vmem:[%s1767_s3 + $0x78] sm:$0xff]  ;;  %v1616_v11 = vld [vmem:[%s1766_s2] ss:$0 sm:$0xff] }
  0x2c   :  { %1101 = vmatpush3.bf16.msra.mxu0 %v1345_v17  ;;  %v1318_v8 = vpack.c.bf16 %v628_v7, %v627_v6 }
  0x2d   :  { %1102 = vmatprep.subr.bf16.mxu0 %v1346_v19 }
  0x2e   :  { %1213 = vmatpush3.bf16.msra.mxu1 %v1347_v18 }
  0x2f   :  { %1214 = vmatprep.subr.bf16.mxu1 %v1350_v22 }
  0x30   :  { %1103 = vmatpush3.bf16.msra.mxu0 %v1348_v20 }
  0x31   :  { %1104 = vmatprep.subr.bf16.mxu0 %v1349_v21 }
  0x32   :  { %1215 = vmatpush3.bf16.msra.mxu1 %v1350_v22 }
  0x33   :  { %1216 = vmatprep.subr.bf16.mxu1 %v1355_v26 }
  0x34   :  { %1105 = vmatpush3.bf16.msra.mxu0 %v1351_v24 }
  0x36   :  { %1217 = vmatpush3.bf16.msra.mxu1 %v1355_v26 }
  0x37   :  { %436 = vmatmul.mubr.bf16.vlgmr.msra.gmra.mrb[0].mxu0 %v1352_v27  ;;  %1291 = vmatprep.subr.bf16.mxu1 %v1290_v39 }
  0x38   :  { %443 = vmatprep.mubr.bf16.mxu0 %v1358_v28 }
  0x39   :  { %1219 = vmatmul.mubr.bf16.vlgmr.msra.gmra.mrb[0].mxu1 %v1357_v29 }
  0x3a   :  { %1222 = vmatprep.mubr.bf16.mxu1 %v1364_v30  ;;  %1293 = vmatpush3.bf16.msra.mxu1 %v1290_v39 }
  0x3b   :  { %1295 = vmatprep.subr.bf16.mxu1 %v1294_v40 }
  0x3e   :  { %1297 = vmatpush3.bf16.msra.mxu1 %v1294_v40 }
  0x3f   :  { %444 = vmatmul.mubr.bf16.gmra.mrb[4].mxu0 %v1360_v31  ;;  %1299 = vmatprep.subr.bf16.mxu1 %v1298_v45 }
  0x40   :  { %451 = vmatprep.mubr.bf16.mxu0 %v1361_v32 }
  0x41   :  { %1223 = vmatmul.mubr.bf16.gmra.mrb[4].mxu1 %v1365_v33 }
  0x42   :  { %1226 = vmatprep.mubr.bf16.mxu1 %v1372_v34  ;;  %1301 = vmatpush3.bf16.msra.mxu1 %v1298_v45 }
  0x43   :  { %1303 = vmatprep.subr.bf16.mxu1 %v1302_v50 }
  0x46   :  { %1305 = vmatpush3.bf16.msra.mxu1 %v1302_v50 }
  0x47   :  { %452 = vmatmul.mubr.bf16.gmra.mrb[8].mxu0 %v1363_v43  ;;  %1307 = vmatprep.subr.bf16.mxu1 %v1306_v55 }
  0x48   :  { %459 = vmatprep.mubr.bf16.mxu0 %v1366_v44 }
  0x49   :  { %1227 = vmatmul.mubr.bf16.gmra.mrb[8].mxu1 %v1373_v46 }
  0x4a   :  { %1230 = vmatprep.mubr.bf16.mxu1 %v1380_v49  ;;  %1309 = vmatpush3.bf16.msra.mxu1 %v1306_v55 }
  0x4b   :  { %1311 = vmatprep.subr.bf16.mxu1 %v1310_v2 }
  0x4e   :  { %1313 = vmatpush3.bf16.msra.mxu1 %v1310_v2 }
  0x4f   :  { %460 = vmatmul.mubr.bf16.gmra.mrb[12].mxu0 %v1368_v53  ;;  %1315 = vmatprep.subr.bf16.mxu1 %v1314_v5 }
  0x50   :  { %467 = vmatprep.mubr.bf16.mxu0 %v1369_v54 }
  0x51   :  { %1231 = vmatmul.mubr.bf16.gmra.mrb[12].mxu1 %v1381_v56 }
  0x52   :  { %1317 = vmatpush3.bf16.msra.mxu1 %v1314_v5 }
  0x53   :  { %1319 = vmatprep.subr.bf16.mxu1 %v1318_v8 }
  0x56   :  { %1321 = vmatpush3.bf16.msra.mxu1 %v1318_v8 }
  0x57   :  { %468 = vmatmul.mubr.bf16.gmra.mrb[16].mxu0 %v1371_v57 }
  0x58   :  { %475 = vmatprep.mubr.bf16.mxu0 %v1374_v58 }
  0x5f   :  { %476 = vmatmul.mubr.bf16.gmra.mrb[20].mxu0 %v1376_v59 }
  0x60   :  { %483 = vmatprep.mubr.bf16.mxu0 %v1377_v60 }
  0x67   :  { %484 = vmatmul.mubr.bf16.gmra.mrb[24].mxu0 %v1379_v61 }
  0x68   :  { %491 = vmatprep.mubr.bf16.mxu0 %v1382_v62 }
  0x6f   :  { %492 = vmatmul.mubr.bf16.gmra.mrb[28].mxu0 %v1384_v63 }
 0x10a   :  { %v1106_v9 = vpop.f32.mrb[0].mxu0 }
 0x10b   :  { %v1107_v10 = vpop.f32.mrb[1].mxu0 }
 0x10c   :  { %v1108_v12 = vadd.f32 %v1107_v10, %v1106_v9  ;;  %v1109_v13 = vpop.f32.mrb[2].mxu0  ;;  %v1220_v15 = vpop.f32.mrb[0].mxu1 }
 0x10d   :  { %v1110_v14 = vpop.f32.mrb[3].mxu0  ;;  %v534_v18 = vpop.f32.mrb[1].mxu1 }
 0x10e   :  { %v1111_v16 = vadd.f32 %v1110_v14, %v1109_v13  ;;  %v438_v17 = vadd.f32 %v1108_v12, %v1616_v11  ;;  %v1221_v19 = vpop.f32.mrb[2].mxu1 }
 0x10f   :  { %v537_v22 = vpop.f32.mrb[3].mxu1 }
 0x110   :  { %v535_v20 = vadd.f32 %v534_v18, %v438_v17  ;;  %v441_v21 = vadd.f32 %v1111_v16, %v1616_v11 }
 0x112   :  { %v597_v23 = vmax.f32 %v535_v20, 0.0  ;;  %v538_v24 = vadd.f32 %v537_v22, %v441_v21  ;;  %v1112_v25 = vpop.f32.mrb[4].mxu0 }
 0x113   :  { %v1113_v26 = vpop.f32.mrb[5].mxu0 }
 0x114   :  { %v598_v27 = vmax.f32 %v538_v24, 0.0  ;;  %v1114_v28 = vadd.f32 %v1113_v26, %v1112_v25  ;;  %v1115_v29 = vpop.f32.mrb[6].mxu0  ;;  %1266 = vmatprep.mubr.f32.mxu1 %v597_v23  ;;  %v1224_v31 = vpop.f32.mrb[4].mxu1 }
 0x115   :  { %v1116_v30 = vpop.f32.mrb[7].mxu0  ;;  %v550_v34 = vpop.f32.mrb[5].mxu1 }
 0x116   :  { %v446_v32 = vadd.f32 %v1114_v28, %v1616_v11  ;;  %v1117_v33 = vadd.f32 %v1116_v30, %v1115_v29  ;;  %1267 = vmatmul.mubr.f32.vlgmr.msra.gmra.mrb[16].mxu1 %v598_v27  ;;  %v1225_v35 = vpop.f32.mrb[6].mxu1 }
 0x117   :  { %v553_v38 = vpop.f32.mrb[7].mxu1 }
 0x118   :  { %v449_v36 = vadd.f32 %v1117_v33, %v1616_v11  ;;  %v543_v37 = vadd.f32 %v1220_v15, %v446_v32 }
 0x11a   :  { %v1118_v39 = vpop.f32.mrb[8].mxu0  ;;  %v599_v40 = vmax.f32 %v543_v37, 0.0  ;;  %v546_v41 = vadd.f32 %v1221_v19, %v449_v36 }
 0x11b   :  { %v1119_v42 = vpop.f32.mrb[9].mxu0 }
 0x11c   :  { %v1120_v43 = vadd.f32 %v1119_v42, %v1118_v39  ;;  %v1121_v44 = vpop.f32.mrb[10].mxu0  ;;  %1269 = vmatprep.mubr.f32.mxu1 %v599_v40  ;;  %v600_v45 = vmax.f32 %v546_v41, 0.0  ;;  %v1228_v47 = vpop.f32.mrb[8].mxu1 }
 0x11d   :  { %v1122_v46 = vpop.f32.mrb[11].mxu0  ;;  %v566_v50 = vpop.f32.mrb[9].mxu1 }
 0x11e   :  { %v454_v48 = vadd.f32 %v1120_v43, %v1616_v11  ;;  %v1123_v49 = vadd.f32 %v1122_v46, %v1121_v44  ;;  %1270 = vmatmul.mubr.f32.gmra.mrb[18].mxu1 %v600_v45  ;;  %v1229_v51 = vpop.f32.mrb[10].mxu1 }
 0x11f   :  { %v569_v54 = vpop.f32.mrb[11].mxu1 }
 0x120   :  { %v551_v52 = vadd.f32 %v550_v34, %v454_v48  ;;  %v457_v53 = vadd.f32 %v1123_v49, %v1616_v11 }
 0x122   :  { %v601_v55 = vmax.f32 %v551_v52, 0.0  ;;  %v554_v56 = vadd.f32 %v553_v38, %v457_v53  ;;  %v1124_v57 = vpop.f32.mrb[12].mxu0 }
 0x123   :  { %v1125_v58 = vpop.f32.mrb[13].mxu0 }
 0x124   :  { %v602_v59 = vmax.f32 %v554_v56, 0.0  ;;  %v1126_v60 = vadd.f32 %v1125_v58, %v1124_v57  ;;  %v1127_v61 = vpop.f32.mrb[14].mxu0  ;;  %1272 = vmatprep.mubr.f32.mxu1 %v601_v55  ;;  %v1624_v63 = vpop.f32.mrb[12].mxu1 }
 0x125   :  { %v1128_v62 = vpop.f32.mrb[15].mxu0  ;;  %v582_v2 = vpop.f32.mrb[13].mxu1 }
 0x126   :  { %v462_v0 = vadd.f32 %v1126_v60, %v1616_v11  ;;  %v1129_v1 = vadd.f32 %v1128_v62, %v1127_v61  ;;  %1273 = vmatmul.mubr.f32.gmra.mrb[20].mxu1 %v602_v59  ;;  %v1233_v3 = vpop.f32.mrb[14].mxu1  ;;  %v1436_v59 = vmov 0   ;;  %v1640_v60 = vld [vmem:[%s1768_s4] ss:$0 sm:$0xff]  ;;  %s1437_s4 = smov [#allocation6]  }
 0x127   :  { %v585_v6 = vpop.f32.mrb[15].mxu1  ;;  %1327 = vset.pattern.permute.xlu1 %v1436_v59  ;;  %1328 = vset.pattern.permute.xlu0 %v1436_v59 }
 0x128   :  { %v465_v4 = vadd.f32 %v1129_v1, %v1616_v11  ;;  %v559_v5 = vadd.f32 %v1224_v31, %v462_v0 }
 0x12a   :  { %v1130_v7 = vpop.f32.mrb[16].mxu0  ;;  %v603_v8 = vmax.f32 %v559_v5, 0.0  ;;  %v562_v9 = vadd.f32 %v1225_v35, %v465_v4 }
 0x12b   :  { %v1131_v10 = vpop.f32.mrb[17].mxu0 }
 0x12c   :  { %v1132_v12 = vadd.f32 %v1131_v10, %v1130_v7  ;;  %v1133_v13 = vpop.f32.mrb[18].mxu0  ;;  %1275 = vmatprep.mubr.f32.mxu1 %v603_v8  ;;  %v604_v14 = vmax.f32 %v562_v9, 0.0 }
 0x12d   :  { %v1134_v15 = vpop.f32.mrb[19].mxu0 }
 0x12e   :  { %v1135_v16 = vadd.f32 %v1134_v15, %v1133_v13  ;;  %1276 = vmatmul.mubr.f32.gmra.mrb[22].mxu1 %v604_v14  ;;  %v470_v17 = vadd.f32 %v1132_v12, %v1616_v11 }
 0x130   :  { %v567_v18 = vadd.f32 %v566_v50, %v470_v17  ;;  %v473_v19 = vadd.f32 %v1135_v16, %v1616_v11 }
 0x132   :  { %v605_v20 = vmax.f32 %v567_v18, 0.0  ;;  %v570_v21 = vadd.f32 %v569_v54, %v473_v19  ;;  %v1136_v22 = vpop.f32.mrb[20].mxu0 }
 0x133   :  { %v1137_v23 = vpop.f32.mrb[21].mxu0 }
 0x134   :  { %v606_v24 = vmax.f32 %v570_v21, 0.0  ;;  %v1138_v25 = vadd.f32 %v1137_v23, %v1136_v22  ;;  %v1139_v26 = vpop.f32.mrb[22].mxu0  ;;  %1278 = vmatprep.mubr.f32.mxu1 %v605_v20 }
 0x135   :  { %v1140_v27 = vpop.f32.mrb[23].mxu0 }
 0x136   :  { %v478_v28 = vadd.f32 %v1138_v25, %v1616_v11  ;;  %v1141_v29 = vadd.f32 %v1140_v27, %v1139_v26  ;;  %1279 = vmatmul.mubr.f32.gmra.mrb[24].mxu1 %v606_v24 }
 0x138   :  { %v481_v30 = vadd.f32 %v1141_v29, %v1616_v11  ;;  %v575_v31 = vadd.f32 %v1228_v47, %v478_v28 }
 0x13a   :  { %v1142_v32 = vpop.f32.mrb[24].mxu0  ;;  %v607_v33 = vmax.f32 %v575_v31, 0.0  ;;  %v578_v34 = vadd.f32 %v1229_v51, %v481_v30 }
 0x13b   :  { %v1143_v35 = vpop.f32.mrb[25].mxu0 }
 0x13c   :  { %v1144_v36 = vadd.f32 %v1143_v35, %v1142_v32  ;;  %v1145_v37 = vpop.f32.mrb[26].mxu0  ;;  %1281 = vmatprep.mubr.f32.mxu1 %v607_v33  ;;  %v608_v38 = vmax.f32 %v578_v34, 0.0 }
 0x13d   :  { %v1146_v39 = vpop.f32.mrb[27].mxu0 }
 0x13e   :  { %v1147_v40 = vadd.f32 %v1146_v39, %v1145_v37  ;;  %1282 = vmatmul.mubr.f32.gmra.mrb[26].mxu1 %v608_v38  ;;  %v486_v41 = vadd.f32 %v1144_v36, %v1616_v11 }
 0x140   :  { %v583_v42 = vadd.f32 %v582_v2, %v486_v41  ;;  %v489_v43 = vadd.f32 %v1147_v40, %v1616_v11 }
 0x142   :  { %v609_v44 = vmax.f32 %v583_v42, 0.0  ;;  %v586_v45 = vadd.f32 %v585_v6, %v489_v43  ;;  %v1148_v46 = vpop.f32.mrb[28].mxu0 }
 0x143   :  { %v1149_v47 = vpop.f32.mrb[29].mxu0 }
 0x144   :  { %v610_v48 = vmax.f32 %v586_v45, 0.0  ;;  %v1150_v49 = vadd.f32 %v1149_v47, %v1148_v46  ;;  %v1151_v50 = vpop.f32.mrb[30].mxu0  ;;  %1284 = vmatprep.mubr.f32.mxu1 %v609_v44  ;;  %v869_v45 = vld [vmem:[#allocation2] sm:$0x1] }
 0x145   :  { %v1152_v51 = vpop.f32.mrb[31].mxu0 }
 0x146   :  { %v494_v52 = vadd.f32 %v1150_v49, %v1616_v11  ;;  %v1153_v53 = vadd.f32 %v1152_v51, %v1151_v50  ;;  %1285 = vmatmul.mubr.f32.gmra.mrb[28].mxu1 %v610_v48 }
 0x148   :  { %v497_v54 = vadd.f32 %v1153_v53, %v1616_v11  ;;  %v591_v55 = vadd.f32 %v1624_v63, %v494_v52  ;;  %v1647_v63 = vld [vmem:[%s1769_s5] ss:$0 sm:$0xff]  ;;  %s1030_s5 = sshll.u32 %s1437_s4, 4  ;;  %s1031_s5 = int_to_ptr.vmem [resolvable:$true] %s1030_s5 }
 0x149   :  { %s1407_s23 = scalar_lea.vmem %s1031_s5, 16  ;;  %s1411_s24 = scalar_lea.vmem %s1031_s5, 32 }
 0x14a   :  { %v611_v56 = vmax.f32 %v591_v55, 0.0  ;;  %v594_v57 = vadd.f32 %v1233_v3, %v497_v54  ;;  %p1408_p8 = scmp.ne.s32.totalorder %s1031_s5, %s1407_s23  ;;  %p1412_p9 = scmp.lt.s32.totalorder %s1031_s5, %s1031_s5 }
 0x14b   :  { %p1413_p10 = scmp.lt.s32.totalorder %s1411_s24, %s1407_s23 }
 0x14c   :  { %1287 = vmatprep.mubr.f32.mxu1 %v611_v56  ;;  %v612_v58 = vmax.f32 %v594_v57, 0.0 }
 0x14d   :  { %p1414_p11 = por %p1413_p10, %p1412_p9 }
 0x14e   :  { %1288 = vmatmul.mubr.f32.gmra.mrb[30].mxu1 %v612_v58 }
 0x14f   :  { %p1415_p12 = pnand %p1414_p11, %p1408_p8 }
 0x1e9   :  { %v1268_v61 = vpop.f32.mrb[16].mxu1 }
 0x1ea   :  { %v708_v62 = vadd.f32 %v1268_v61, %v1640_v60  ;;  %v702_v0 = vpop.f32.mrb[17].mxu1 }
 0x1eb   :  { %v703_v11 = vadd.f32 %v1640_v60, %v702_v0 }
 0x1ec   :  { %v782_v1 = vmax.f32 %v708_v62, 0.0 }
 0x1ed   :  { %v781_v2 = vmax.f32 %v703_v11, 0.0 }
 0x1ee   :  { %v805_v3 = vmul.f32 %v1647_v63, %v782_v1 }
 0x1ef   :  { %v804_v5 = vmul.f32 %v1647_v63, %v781_v2 }
 0x1f0   :  { %v824_v4 = vsel %vm820_vm0, %v805_v3, 0.0 }
 0x1f1   :  { %825 = vadd.xlane.f32.xlu0 %v824_v4  ;;  %v1271_v6 = vpop.f32.mrb[18].mxu1  ;;  %v821_v12 = vsel %vm820_vm0, %v804_v5, 0.0 }
 0x1f2   :  { %v718_v7 = vadd.f32 %v1271_v6, %v1640_v60  ;;  %v712_v8 = vpop.f32.mrb[19].mxu1 }
 0x1f3   :  { %v713_v9 = vadd.f32 %v1640_v60, %v712_v8 }
 0x1f4   :  { %v784_v10 = vmax.f32 %v718_v7, 0.0 }
 0x1f5   :  { %v783_v13 = vmax.f32 %v713_v9, 0.0  ;;  %822 = vadd.xlane.f32.xlu0 %v821_v12 }
 0x1f6   :  { %v807_v14 = vmul.f32 %v1647_v63, %v784_v10 }
 0x1f7   :  { %v806_v16 = vmul.f32 %v1647_v63, %v783_v13 }
 0x1f8   :  { %v830_v15 = vsel %vm820_vm0, %v807_v14, 0.0 }
 0x1f9   :  { %831 = vadd.xlane.f32.xlu1 %v830_v15  ;;  %v1274_v17 = vpop.f32.mrb[20].mxu1  ;;  %v827_v22 = vsel %vm820_vm0, %v806_v16, 0.0 }
 0x1fa   :  { %v728_v18 = vadd.f32 %v1274_v17, %v1640_v60  ;;  %v722_v19 = vpop.f32.mrb[21].mxu1 }
 0x1fb   :  { %v723_v20 = vadd.f32 %v1640_v60, %v722_v19 }
 0x1fc   :  { %v786_v21 = vmax.f32 %v728_v18, 0.0 }
 0x1fd   :  { %v785_v23 = vmax.f32 %v723_v20, 0.0  ;;  %828 = vadd.xlane.f32.xlu1 %v827_v22  ;;  %v875_v22 = vlaneseq }
 0x1fe   :  { %v809_v24 = vmul.f32 %v1647_v63, %v786_v21 }
 0x1ff   :  { %v808_v25 = vmul.f32 %v1647_v63, %v785_v23 }
 0x200   :  { %v836_v26 = vsel %vm820_vm0, %v809_v24, 0.0 }
 0x201   :  { %v1277_v27 = vpop.f32.mrb[22].mxu1  ;;  %837 = vadd.xlane.f32.xlu1 %v836_v26  ;;  %v833_v28 = vsel %vm820_vm0, %v808_v25, 0.0  ;;  %v1695_v25 = vshrl.u32 %v875_v22, 7 }
 0x202   :  { %v738_v29 = vadd.f32 %v1277_v27, %v1640_v60  ;;  %v732_v30 = vpop.f32.mrb[23].mxu1  ;;  %834 = vadd.xlane.f32.xlu0 %v833_v28  ;;  %v1698_v27 = vand.u32 127, %v875_v22 }
 0x203   :  { %v733_v31 = vadd.f32 %v1640_v60, %v732_v30  ;;  %v877_v26 = vsub.s32 0, %v1695_v25 }
 0x204   :  { %v788_v32 = vmax.f32 %v738_v29, 0.0  ;;  %v917_v30 = vadd.s32 4294967288, %v1698_v27  ;;  %v1008_v22 = vadd.s32 4294967184, %v1698_v27 }
 0x205   :  { %v787_v33 = vmax.f32 %v733_v31, 0.0  ;;  %v924_v31 = vadd.s32 4294967280, %v1698_v27 }
 0x206   :  { %v811_v34 = vmul.f32 %v1647_v63, %v788_v32 }
 0x207   :  { %v810_v36 = vmul.f32 %v1647_v63, %v787_v33 }
 0x208   :  { %v842_v35 = vsel %vm820_vm0, %v811_v34, 0.0 }
 0x209   :  { %v1280_v37 = vpop.f32.mrb[24].mxu1  ;;  %843 = vadd.xlane.f32.xlu0 %v842_v35  ;;  %v839_v42 = vsel %vm820_vm0, %v810_v36, 0.0  ;;  %v915_v35 = vsub.s32 %v1698_v27, %v1695_v25  ;;  %v920_v36 = vsub.s32 %v917_v30, %v1695_v25 }
 0x20a   :  { %v748_v38 = vadd.f32 %v1280_v37, %v1640_v60  ;;  %v742_v39 = vpop.f32.mrb[25].mxu1 }
 0x20b   :  { %v743_v40 = vadd.f32 %v1640_v60, %v742_v39 }
 0x20c   :  { %v790_v41 = vmax.f32 %v748_v38, 0.0  ;;  %v927_v38 = vsub.s32 %v924_v31, %v1695_v25 }
 0x20d   :  { %v789_v43 = vmax.f32 %v743_v40, 0.0  ;;  %840 = vadd.xlane.f32.xlu0 %v839_v42 }
 0x20e   :  { %v813_v44 = vmul.f32 %v1647_v63, %v790_v41  ;;  %v931_v41 = vadd.s32 4294967272, %v1698_v27 }
 0x20f   :  { %v812_v46 = vmul.f32 %v1647_v63, %v789_v43  ;;  %v938_v43 = vadd.s32 4294967264, %v1698_v27 }
 0x210   :  { %v848_v47 = vsel %vm820_vm0, %v813_v44, 0.0 }
 0x211   :  { %v1283_v48 = vpop.f32.mrb[26].mxu1  ;;  %849 = vadd.xlane.f32.xlu0 %v848_v47  ;;  %v845_v51 = vsel %vm820_vm0, %v812_v46, 0.0  ;;  %v934_v47 = vsub.s32 %v931_v41, %v1695_v25 }
 0x212   :  { %v758_v49 = vadd.f32 %v1283_v48, %v1640_v60  ;;  %v752_v50 = vpop.f32.mrb[27].mxu1  ;;  %872 = vperm.xlu1 %1327, %v869_v45  }
 0x213   :  { %v753_v52 = vadd.f32 %v1640_v60, %v752_v50  ;;  %v945_v50 = vadd.s32 4294967256, %v1698_v27 }
 0x214   :  { %v792_v53 = vmax.f32 %v758_v49, 0.0  ;;  %v941_v49 = vsub.s32 %v938_v43, %v1695_v25 }
 0x215   :  { %v791_v54 = vmax.f32 %v753_v52, 0.0  ;;  %846 = vadd.xlane.f32.xlu0 %v845_v51 }
 0x216   :  { %v815_v55 = vmul.f32 %v1647_v63, %v792_v53  ;;  %v952_v53 = vadd.s32 4294967248, %v1698_v27 }
 0x217   :  { %v814_v56 = vmul.f32 %v1647_v63, %v791_v54 }
 0x218   :  { %v854_v57 = vsel %vm820_vm0, %v815_v55, 0.0 }
 0x219   :  { %v1286_v58 = vpop.f32.mrb[28].mxu1  ;;  %v851_v59 = vsel %vm820_vm0, %v814_v56, 0.0 }
 0x21a   :  { %v768_v61 = vadd.f32 %v1286_v58, %v1640_v60  ;;  %852 = vadd.xlane.f32.xlu0 %v851_v59  ;;  %v762_v62 = vpop.f32.mrb[29].mxu1  ;;  %v955_v59 = vsub.s32 %v952_v53, %v1695_v25 }
 0x21b   :  { %v763_v0 = vadd.f32 %v1640_v60, %v762_v62  ;;  %v966_v62 = vadd.s32 4294967232, %v1698_v27 }
 0x21c   :  { %v794_v11 = vmax.f32 %v768_v61, 0.0 }
 0x21d   :  { %v793_v1 = vmax.f32 %v763_v0, 0.0 }
 0x21e   :  { %v817_v2 = vmul.f32 %v1647_v63, %v794_v11  ;;  %v959_v11 = vadd.s32 4294967240, %v1698_v27 }
 0x21f   :  { %v816_v3 = vmul.f32 %v1647_v63, %v793_v1 }
 0x220   :  { %v860_v4 = vsel %vm820_vm0, %v817_v2, 0.0 }
 0x221   :  { %v1289_v5 = vpop.f32.mrb[30].mxu1  ;;  %861 = vadd.xlane.f32.xlu0 %v860_v4  ;;  %v857_v8 = vsel %vm820_vm0, %v816_v3, 0.0  ;;  %v973_v3 = vadd.s32 4294967224, %v1698_v27  ;;  %v980_v4 = vadd.s32 4294967216, %v1698_v27 }
 0x222   :  { %v778_v6 = vadd.f32 %v1289_v5, %v1640_v60  ;;  %v772_v7 = vpop.f32.mrb[31].mxu1 }
 0x223   :  { %v773_v9 = vadd.f32 %v1640_v60, %v772_v7 }
 0x224   :  { %v796_v10 = vmax.f32 %v778_v6, 0.0  ;;  %v969_v6 = vsub.s32 %v966_v62, %v1695_v25 }
 0x225   :  { %v795_v12 = vmax.f32 %v773_v9, 0.0  ;;  %858 = vadd.xlane.f32.xlu0 %v857_v8  ;;  %v962_v8 = vsub.s32 %v959_v11, %v1695_v25 }
 0x226   :  { %v819_v15 = vmul.f32 %v1647_v63, %v796_v10 }
 0x227   :  { %v818_v13 = vmul.f32 %v1647_v63, %v795_v12 }
 0x228   :  { %v866_v16 = vsel %vm820_vm0, %v819_v15, 0.0  ;;  %v987_v15 = vadd.s32 4294967208, %v1698_v27 }
 0x229   :  { %v863_v14 = vsel %vm820_vm0, %v818_v13, 0.0  ;;  %v976_v13 = vsub.s32 %v973_v3, %v1695_v25 }
 0x22a   :  { %864 = vadd.xlane.f32.xlu0 %v863_v14  ;;  %v983_v14 = vsub.s32 %v980_v4, %v1695_v25 }
 0x22e   :  { %867 = vadd.xlane.f32.xlu0 %v866_v16 }
 0x236   :  { %855 = vadd.xlane.f32.xlu1 %v854_v57  ;;  %v948_v57 = vsub.s32 %v945_v50, %v1695_v25 }
 0x27e   :  { %v826_v17 = vpop.xlane.xlu0 %825 }
 0x282   :  { %v823_v18 = vpop.xlane.xlu0 %822 }
 0x286   :  { %v832_v19 = vpop.xlane.xlu1 %831 }
 0x28a   :  { %v829_v21 = vpop.xlane.xlu1 %828 }
 0x28e   :  { %v838_v23 = vpop.xlane.xlu1 %837 }
 0x28f   :  { %v835_v20 = vpop.xlane.xlu0 %834 }
 0x292   :  { %v873_v63 = vpop.permute.xlu1 %872 }
 0x293   :  { %v1700_v29 = vrot.slane %v873_v63, %v877_v26  ;;  %v990_v26 = vsub.s32 %v987_v15, %v1695_v25 }
 0x295   :  { %v879_v33 = vadd.f32 %v1700_v29, %v823_v18  ;;  %v880_v34 = vadd.f32 %v1700_v29, %v826_v17  ;;  %v881_v37 = vadd.f32 %v1700_v29, %v829_v21  ;;  %v882_v45 = vadd.f32 %v1700_v29, %v832_v19 }
 0x296   :  { %v844_v60 = vpop.xlane.xlu0 %843  ;;  %v883_v51 = vadd.f32 %v1700_v29, %v835_v20  ;;  %v884_v55 = vadd.f32 %v1700_v29, %v838_v23  ;;  %v994_v19 = vadd.s32 4294967200, %v1698_v27  ;;  %v1015_v23 = vadd.s32 4294967176, %v1698_v27 }
 0x297   :  { %v916_v39 = vrot.slane %v879_v33, %v915_v35  ;;  %v921_v40 = vrot.slane %v880_v34, %v920_v36  ;;  %v928_v44 = vrot.slane %v881_v37, %v927_v38  ;;  %v935_v54 = vrot.slane %v882_v45, %v934_v47 }
 0x298   :  { %v942_v58 = vrot.slane %v883_v51, %v941_v49  ;;  %v949_v2 = vrot.slane %v884_v55, %v948_v57  ;;  %v886_v9 = vadd.f32 %v1700_v29, %v844_v60  ;;  %v1001_v60 = vadd.s32 4294967192, %v1698_v27 }
 0x299   :  { %v923_v46 = vsel %vm922_vm1, %v921_v40, %v916_v39  ;;  %v997_v31 = vsub.s32 %v994_v19, %v1695_v25  ;;  %v1011_v37 = vsub.s32 %v1008_v22, %v1695_v25  ;;  %v1018_v39 = vsub.s32 %v1015_v23, %v1695_v25 }
 0x29a   :  { %v841_v24 = vpop.xlane.xlu0 %840  ;;  %v930_v52 = vsel %vm929_vm2, %v928_v44, %v923_v46  ;;  %v963_v20 = vrot.slane %v886_v9, %v962_v8  ;;  %v1004_v35 = vsub.s32 %v1001_v60, %v1695_v25 }
 0x29b   :  { %v937_v56 = vsel %vm936_vm3, %v935_v54, %v930_v52  ;;  %v885_v61 = vadd.f32 %v1700_v29, %v841_v24 }
 0x29c   :  { %v944_v1 = vsel %vm943_vm4, %v942_v58, %v937_v56 }
 0x29d   :  { %v956_v5 = vrot.slane %v885_v61, %v955_v59  ;;  %v951_v10 = vsel %vm950_vm5, %v949_v2, %v944_v1 }
 0x29e   :  { %v850_v28 = vpop.xlane.xlu0 %849 }
 0x29f   :  { %v958_v16 = vsel %vm957_vm6, %v956_v5, %v951_v10  ;;  %v888_v21 = vadd.f32 %v1700_v29, %v850_v28 }
 0x2a0   :  { %v965_v24 = vsel %vm964_vm7, %v963_v20, %v958_v16 }
 0x2a1   :  { %v977_v34 = vrot.slane %v888_v21, %v976_v13 }
 0x2a2   :  { %v847_v32 = vpop.xlane.xlu0 %846 }
 0x2a3   :  { %v887_v7 = vadd.f32 %v1700_v29, %v847_v32 }
 0x2a5   :  { %v970_v17 = vrot.slane %v887_v7, %v969_v6 }
 0x2a7   :  { %v853_v42 = vpop.xlane.xlu0 %852  ;;  %v972_v63 = vsel %vm971_vm8, %v970_v17, %v965_v24 }
 0x2a8   :  { %v889_v18 = vadd.f32 %v1700_v29, %v853_v42  ;;  %v979_v40 = vsel %vm978_vm9, %v977_v34, %v972_v63 }
 0x2aa   :  { %v984_v30 = vrot.slane %v889_v18, %v983_v14 }
 0x2ac   :  { %v986_v43 = vsel %vm985_vm10, %v984_v30, %v979_v40 }
 0x2ae   :  { %v862_v48 = vpop.xlane.xlu0 %861 }
 0x2af   :  { %v892_v36 = vadd.f32 %v1700_v29, %v862_v48 }
 0x2b1   :  { %v1005_v45 = vrot.slane %v892_v36, %v1004_v35 }
 0x2b2   :  { %v859_v0 = vpop.xlane.xlu0 %858 }
 0x2b3   :  { %v891_v32 = vadd.f32 %v1700_v29, %v859_v0 }
 0x2b5   :  { %v998_v44 = vrot.slane %v891_v32, %v997_v31 }
 0x2b7   :  { %v865_v12 = vpop.xlane.xlu0 %864 }
 0x2b8   :  { %v893_v38 = vadd.f32 %v1700_v29, %v865_v12 }
 0x2ba   :  { %v1012_v47 = vrot.slane %v893_v38, %v1011_v37 }
 0x2bb   :  { %v868_v33 = vpop.xlane.xlu0 %867 }
 0x2bc   :  { %v894_v41 = vadd.f32 %v1700_v29, %v868_v33 }
 0x2be   :  { %v1019_v25 = vrot.slane %v894_v41, %v1018_v39 }
 0x2c3   :  { %v856_v28 = vpop.xlane.xlu1 %855 }
 0x2c4   :  { %v890_v27 = vadd.f32 %v1700_v29, %v856_v28 }
 0x2c6   :  { %v991_v42 = vrot.slane %v890_v27, %v990_v26 }
 0x2c8   :  { %v993_v46 = vsel %vm992_vm11, %v991_v42, %v986_v43 }
 0x2c9   :  { %v1000_v48 = vsel %vm999_vm12, %v998_v44, %v993_v46 }
 0x2ca   :  { %v1007_v49 = vsel %vm1006_vm13, %v1005_v45, %v1000_v48 }
 0x2cb   :  { %v1014_v50 = vsel %vm1013_vm14, %v1012_v47, %v1007_v49 }
 0x2cc   :  { %v1021_v51 = vsel %vm1020_vm15, %v1019_v25, %v1014_v50 }
 0x2cd   :  { %1023 = vst [vmem:[#allocation6] sm:$0x1] %v1021_v51 }
 0x2ce   :  { %1418 = shalt.err (!%p1415_p12)
}
 0x2cf   :  { %s1419_s27 = scalar_lea.hbm %s1771_s7, 16 }
 0x2d0   :  { %p1420_p13 = scmp.ne.s32.totalorder %s1771_s7, %s1419_s27  ;;  %p1423_p0 = scmp.lt.u32.totalorder %s1419_s27, %s1771_s7 }
 0x2d2   :  { %p1425_p1 = pnand %p1423_p0, %p1420_p13 }
 0x2d4   :  { %1428 = shalt.err (!%p1425_p1)
}
 0x2d5   :  { %1033 = dma.vmem_to_hbm [thread:$0]  %s1031_s5, 16, %s1771_s7, [#allocation5]  }
 0x2d6   :  { %1431 = dma.done.wait [#allocation5], 16  }
 0x2d7   :  { %1432 = vsyncadd [#allocation5], 4294967280 }
 0x2d8   :  { %1037 = vsyncpa [#allocation4], 1 }
 0x2d9   :  { %1038 = vsyncpa [#allocation5], 1 }

</bundles_post_ra>
